<compile_context>
chip_gen: v5e
topology: v5e:2x2
jax: 0.10.0
libtpu: 0.0.40
codegen_flags: <defaults>
</compile_context>

<pallas_src>
import math
import functools

import jax
import jax.numpy as jnp
from jax.experimental import pallas as pl
from jax.experimental.pallas import tpu as pltpu


def _make_pe_table(d_model: int, max_len: int) -> jnp.ndarray:
    """Sinusoidal positional-encoding table, shape [max_len, 1, d_model]."""
    position = jnp.arange(max_len, dtype=jnp.float32)[:, None]          # [L, 1]
    div_term = jnp.exp(
        jnp.arange(0, d_model, 2, dtype=jnp.float32)
        * (-math.log(10000.0) / d_model)
    )                                                                    # [D/2]
    pe = jnp.zeros((max_len, 1, d_model), dtype=jnp.float32)
    pe = pe.at[:, 0, 0::2].set(jnp.sin(position * div_term))
    pe = pe.at[:, 0, 1::2].set(jnp.cos(position * div_term))
    return pe


# ----------------------------------------------------------------------------
# Kernels
# ----------------------------------------------------------------------------

def _pe_add_kernel(batch: int, x_ref, pe_ref, o_ref):
    # x_ref: [TS, B*D], pe_ref: [TS, D]. Broadcast pe across batch along lanes.
    pe_b = jnp.tile(pe_ref[...], (1, batch))          # [TS, B*D]
    o_ref[...] = (x_ref[...] + pe_b).astype(o_ref.dtype)


def _pe_add_dropout_kernel(batch: int, threshold: int, inv_keep: float,
                           x_ref, pe_ref, bits_ref, o_ref):
    # Inverted dropout with an integer-threshold compare on raw uint32 bits:
    # P(bits < threshold) == dropout_p, so keep = bits >= threshold.
    pe_b = jnp.tile(pe_ref[...], (1, batch))          # [TS, B*D]
    y = x_ref[...] + pe_b
    keep = bits_ref[...] >= jnp.uint32(threshold)
    o_ref[...] = jnp.where(keep, y * inv_keep, jnp.zeros_like(y)).astype(o_ref.dtype)


# ----------------------------------------------------------------------------
# Wrapper
# ----------------------------------------------------------------------------

def positional_encoding(x: jnp.ndarray,
                        pe: jnp.ndarray,
                        *,
                        dropout_p: float = 0.1,
                        training: bool = False,
                        seed: int = 0) -> jnp.ndarray:
    """x: [seq_len, batch, d_model]. pe: [max_len, 1, d_model]."""
    S, B, D = x.shape
    dtype = x.dtype
    bd = B * D

    # Lane-dense 2D views (row-major reshape is free).
    x2d = x.reshape(S, bd)                   # [S, B*D]
    pe2d = pe[:S, 0, :].astype(dtype)        # [S, D]   (same as self.pe[:x.size(0)])

    # Tile the sequence axis so each block is ~2 MiB (fits comfortably within
    # the scoped-VMEM defaults on v5e/v6e/v7x with double buffering).
    itemsize = jnp.dtype(dtype).itemsize
    target_bytes = 2 * 1024 * 1024
    ts = max(1, target_bytes // (bd * itemsize))
    ts = max(8, (ts // 8) * 8)               # keep sublane dim a multiple of 8
    if ts > S:
        ts = S                               # full-extent block is always legal
    grid = (pl.cdiv(S, ts),)

    x_spec = pl.BlockSpec((ts, bd), lambda i: (i, 0))
    pe_spec = pl.BlockSpec((ts, D), lambda i: (i, 0))
    cparams = pltpu.CompilerParams(dimension_semantics=("parallel",))
    out_shape = jax.ShapeDtypeStruct((S, bd), dtype)

    if training and dropout_p > 0.0:
        # Random bits generated once in plain JAX (pltpu.prng_* is TPU-only and
        # breaks interpret mode); only paid for in training.
        key = jax.random.PRNGKey(seed)
        bits = jax.random.bits(key, (S, bd), dtype=jnp.uint32)
        threshold = min(int(round(dropout_p * 4294967296.0)), 4294967295)
        inv_keep = 1.0 / (1.0 - dropout_p)
        kernel = functools.partial(_pe_add_dropout_kernel, B, threshold, inv_keep)
        out2d = pl.pallas_call(
            kernel,
            out_shape=out_shape,
            grid=grid,
            in_specs=[x_spec, pe_spec, x_spec],
            out_specs=x_spec,
            compiler_params=cparams,
        )(x2d, pe2d, bits)
    else:
        kernel = functools.partial(_pe_add_kernel, B)
        out2d = pl.pallas_call(
            kernel,
            out_shape=out_shape,
            grid=grid,
            in_specs=[x_spec, pe_spec],
            out_specs=x_spec,
            compiler_params=cparams,
        )(x2d, pe2d)

    return out2d.reshape(S, B, D)


# ----------------------------------------------------------------------------
# Demo / self-check
# ----------------------------------------------------------------------------

if __name__ == "__main__":
    seq_len, batch, d_model, max_len = 8, 2, 32, 64

    key = jax.random.PRNGKey(0)
    x = jax.random.normal(key, (seq_len, batch, d_model), dtype=jnp.float32)

    pe = _make_pe_table(d_model, max_len)

    # Eval-mode forward (dropout = identity): exact check vs pure-JAX reference.
    out_eval = positional_encoding(x, pe, dropout_p=0.1, training=False)
    out_eval = jax.block_until_ready(out_eval)
    ref = x + pe[:seq_len]
    assert jnp.allclose(out_eval, ref, atol=1e-6), "eval-mode mismatch"

    # Train-mode forward (exercises the dropout path).
    out_train = positional_encoding(x, pe, dropout_p=0.1, training=True, seed=123)
    out_train = jax.block_until_ready(out_train)
    assert out_train.shape == (seq_len, batch, d_model)
    # Surviving entries must equal (x + pe) / (1 - p); dropped entries are 0.
    ref_scaled = ref / (1.0 - 0.1)
    mask = out_train != 0.0
    assert jnp.allclose(jnp.where(mask, out_train, ref_scaled), ref_scaled,
                        atol=1e-4), "train-mode scaling mismatch"

    print("KERNEL_OK")
</pallas_src>

<mosaic_0001>
module attributes {stable_mosaic.version = 11 : i64} {
  func.func @_pe_add_kernel(%arg0: i32, %arg1: memref<8x64xf32, #tpu.memory_space<vmem>>, %arg2: memref<8x32xf32, #tpu.memory_space<vmem>>, %arg3: memref<8x64xf32, #tpu.memory_space<vmem>>) attributes {dimension_semantics = [#tpu.dimension_semantics<parallel>], iteration_bounds = array<i64: 1>, scalar_prefetch = 0 : i64, scratch_operands = 0 : i64, tpu.core_type = #tpu.core_type<tc>, window_params = [{transform_indices = @transform_0, window_bounds = array<i64: 8, 64>}, {transform_indices = @transform_1, window_bounds = array<i64: 8, 32>}, {transform_indices = @transform_2, window_bounds = array<i64: 8, 64>}]} {
    %c0 = arith.constant 0 : index
    %c0_0 = arith.constant 0 : index
    %0 = vector.load %arg2[%c0, %c0_0] : memref<8x32xf32, #tpu.memory_space<vmem>>, vector<8x32xf32>
    %1 = tpu.concatenate %0, %0 in 1 : vector<8x32xf32>, vector<8x32xf32> -> vector<8x64xf32>
    %c0_1 = arith.constant 0 : index
    %c0_2 = arith.constant 0 : index
    %2 = vector.load %arg1[%c0_1, %c0_2] : memref<8x64xf32, #tpu.memory_space<vmem>>, vector<8x64xf32>
    %3 = arith.addf %2, %1 : vector<8x64xf32>
    %c0_3 = arith.constant 0 : index
    %c0_4 = arith.constant 0 : index
    %4 = vector.load %arg3[%c0_3, %c0_4] : memref<8x64xf32, #tpu.memory_space<vmem>>, vector<8x64xf32>
    tpu.vector_store %arg3[%c0_3, %c0_4], %3 {strides = array<i32>} : memref<8x64xf32, #tpu.memory_space<vmem>>, vector<8x64xf32>,
    return
  }
  func.func @transform_0(%arg0: i32) -> (i32, i32) {
    %c0_i32 = arith.constant 0 : i32
    %c0_i32_0 = arith.constant 0 : i32
    return %arg0, %c0_i32 : i32, i32
  }
  func.func @transform_1(%arg0: i32) -> (i32, i32) {
    %c0_i32 = arith.constant 0 : i32
    %c0_i32_0 = arith.constant 0 : i32
    return %arg0, %c0_i32 : i32, i32
  }
  func.func @transform_2(%arg0: i32) -> (i32, i32) {
    %c0_i32 = arith.constant 0 : i32
    %c0_i32_0 = arith.constant 0 : i32
    return %arg0, %c0_i32 : i32, i32
  }
}

</mosaic_0001>

<bundles_post_ra>
// kernel: tpu_custom_call.1
= control target key start
LH: loop header
LB: loop body
LE: loop exit
PB: predicated region body
PF: predicated region fallthrough
CT: control target
= control target key end

     0   :  { %7 = vsyncpa [#allocation3], 0  ;;  %s179_s0 = inlined_call_operand.hbm [shape: f32[8,64], index: 0, kind: input, shape index: {}]   ;;  %s180_s1 = inlined_call_operand.hbm [shape: f32[8,32], index: 1, kind: input, shape index: {}]   ;;  %s181_s2 = inlined_call_operand.hbm [shape: f32[8,64], index: 2, kind: output, shape index: {}]  }
   0x1   :  { %8 = vsyncpa [#allocation6], 0 }
   0x2   :  { %9 = vsyncpa [#allocation4], 0  ;;  %s15_s11 = sshll.u32 %s179_s0, 4  ;;  %s151_s12 = smov [#allocation2]   ;;  %s16_s11 = int_to_ptr.hbm [resolvable:$true] %s15_s11 }
   0x3   :  { %s17_s13 = sshll.u32 %s151_s12, 4  ;;  %s26_s16 = sshll.u32 %s180_s1, 4  ;;  %s18_s13 = int_to_ptr.vmem [resolvable:$true] %s17_s13  ;;  %s27_s16 = int_to_ptr.hbm [resolvable:$true] %s26_s16 }
   0x4   :  { %20 = dma.hbm_to_vmem [thread:$0]  %s16_s11, 128, %s18_s13, [#allocation3]  }
   0x5   :  { %s152_s17 = smov [#allocation5]  }
   0x6   :  { %s28_s18 = sshll.u32 %s152_s17, 4  ;;  %s29_s18 = int_to_ptr.vmem [resolvable:$true] %s28_s18 }
   0x7   :  { %31 = dma.hbm_to_vmem [thread:$0]  %s27_s16, 128, %s29_s18, [#allocation6]  }
   0x8   :  { %145 = dma.done.wait [#allocation3], 128  }
   0x9   :  { %146 = vsyncadd [#allocation3], 4294967168 }
   0xa   :  { %147 = dma.done.wait [#allocation6], 128  }
   0xb   :  { %148 = vsyncadd [#allocation6], 4294967168  ;;  %v40_v0 = vld [vmem:[#allocation5] sm:$0xff]  ;;  %s153_s0 = smov 32   ;;  %vm45_vm0 = vcmask 261120   ;;  %v47_v1 = vld [vmem:[#allocation2] sm:$0xff] }
   0xc   :  { %42 = vrot.lane.b32.xlu0 %v40_v0, %s153_s0  ;;  %s154_s19 = smov [#allocation7]   ;;  %s58_s1 = sshll.u32 %s181_s2, 4  ;;  %vm49_vm1 = vcmask 523264   ;;  %s59_s1 = int_to_ptr.hbm [resolvable:$true] %s58_s1 }
   0xd   :  { %s56_s20 = sshll.u32 %s154_s19, 4  ;;  %s57_s20 = int_to_ptr.vmem [resolvable:$true] %s56_s20 }
  0x7e   :  { %v43_v2 = vpop.permute.xlu0 %42 }
  0x7f   :  { %v46_v3 = vsel %vm45_vm0, %v40_v0, %v43_v2 }
  0x80   :  { %v48_v4 = vadd.f32 %v47_v1, %v46_v3 }
  0x82   :  { %50 = vst.msk [vmem:[#allocation7] sm:$0xff] %vm49_vm1, %v48_v4 }
  0x83   :  { %61 = dma.vmem_to_hbm [thread:$0]  %s57_s20, 128, %s59_s1, [#allocation4]  }
  0x84   :  { %149 = dma.done.wait [#allocation4], 128  }
  0x85   :  { %150 = vsyncadd [#allocation4], 4294967168 }
  0x86   :  { %66 = vsyncpa [#allocation3], 1 }
  0x87   :  { %67 = vsyncpa [#allocation6], 1 }
  0x88   :  { %68 = vsyncpa [#allocation4], 1 }

</bundles_post_ra>
